<compile_context>
chip_gen: v5e
topology: v5e:2x2
jax: 0.10.0
libtpu: 0.0.40
codegen_flags: <defaults>
</compile_context>

<pallas_src>
import math
from functools import partial

import jax
import jax.numpy as jnp
import numpy as np
from jax import lax
from jax.experimental import pallas as pl
from jax.experimental.pallas import tpu as pltpu


# ------------------------------- helpers ----------------------------------- #
def _pick_tile(dim, prefs):
    """Largest preferred tile that evenly divides `dim`, else the full dim."""
    for p in prefs:
        if p <= dim and dim % p == 0:
            return p
    return dim


def _pick_head_group(num_heads, head_dim):
    """Smallest head group whose lane width (g*head_dim) is a multiple of 128.

    Falls back to all heads (full lane width) when no 128-aligned grouping
    exists (e.g. tiny test configs where H itself is < 128).
    """
    for g in range(1, num_heads + 1):
        if num_heads % g == 0 and (g * head_dim) % 128 == 0:
            return g
    return num_heads


# --------------------------- Linear kernels --------------------------------- #
def _linear_kernel(x_ref, w_ref, b_ref, o_ref):
    """y = x @ W^T + b; W is (N, K) PyTorch layout, resident in VMEM."""
    x = x_ref[...].astype(jnp.bfloat16)
    y = lax.dot_general(
        x, w_ref[...],
        dimension_numbers=(((1,), (1,)), ((), ())),   # contract K of both
        preferred_element_type=jnp.float32,
    )
    o_ref[...] = (y + b_ref[...]).astype(o_ref.dtype)


def pallas_linear(x2d, w_bf16, b_f32, *, out_dtype=jnp.bfloat16):
    """x2d: (M, K) f32; w_bf16: (N, K) bf16; b_f32: (N,) -> (M, N) bf16."""
    M, K = x2d.shape
    N = w_bf16.shape[0]
    tm = _pick_tile(M, (1024, 512, 256, 128))
    return pl.pallas_call(
        _linear_kernel,
        out_shape=jax.ShapeDtypeStruct((M, N), out_dtype),
        grid=(M // tm,),
        in_specs=[
            pl.BlockSpec((tm, K), lambda i: (i, 0)),
            pl.BlockSpec((N, K), lambda i: (0, 0)),    # weight resident in VMEM
            pl.BlockSpec((1, N), lambda i: (0, 0)),    # bias resident in VMEM
        ],
        out_specs=pl.BlockSpec((tm, N), lambda i: (i, 0)),
        compiler_params=pltpu.CompilerParams(
            dimension_semantics=("parallel",)),
    )(x2d, w_bf16, b_f32.reshape(1, -1))


def _kv_linear_kernel(x_ref, wk_ref, wv_ref, bk_ref, bv_ref, k_ref, v_ref):
    """Fused K/V projections over the same context tile (one HBM read of x)."""
    x = x_ref[...].astype(jnp.bfloat16)
    k = lax.dot_general(
        x, wk_ref[...],
        dimension_numbers=(((1,), (1,)), ((), ())),
        preferred_element_type=jnp.float32,
    )
    v = lax.dot_general(
        x, wv_ref[...],
        dimension_numbers=(((1,), (1,)), ((), ())),
        preferred_element_type=jnp.float32,
    )
    k_ref[...] = (k + bk_ref[...]).astype(k_ref.dtype)
    v_ref[...] = (v + bv_ref[...]).astype(v_ref.dtype)


def pallas_kv_linear(x2d, wk_bf16, wv_bf16, bk_f32, bv_f32, *,
                     out_dtype=jnp.bfloat16):
    """x2d: (M, K); wk/wv: (N, K) bf16 -> two (M, N) bf16 outputs (K and V)."""
    M, K = x2d.shape
    N = wk_bf16.shape[0]
    tm = _pick_tile(M, (1024, 512, 256, 128))
    return pl.pallas_call(
        _kv_linear_kernel,
        out_shape=(jax.ShapeDtypeStruct((M, N), out_dtype),
                   jax.ShapeDtypeStruct((M, N), out_dtype)),
        grid=(M // tm,),
        in_specs=[
            pl.BlockSpec((tm, K), lambda i: (i, 0)),
            pl.BlockSpec((N, K), lambda i: (0, 0)),    # resident
            pl.BlockSpec((N, K), lambda i: (0, 0)),    # resident
            pl.BlockSpec((1, N), lambda i: (0, 0)),
            pl.BlockSpec((1, N), lambda i: (0, 0)),
        ],
        out_specs=(pl.BlockSpec((tm, N), lambda i: (i, 0)),
                   pl.BlockSpec((tm, N), lambda i: (i, 0))),
        compiler_params=pltpu.CompilerParams(
            dimension_semantics=("parallel",)),
    )(x2d, wk_bf16, wv_bf16, bk_f32.reshape(1, -1), bv_f32.reshape(1, -1))


# --------------------------- Attention kernel ------------------------------- #
def _attn_kernel(q_ref, k_ref, v_ref, m_ref, o_ref, *, heads_per_group, head_dim):
    """One (batch, head-group) per grid step.

    q_ref : (1, Sq, G*D) bf16   (already scaled by 1/sqrt(D) via wq)
    k_ref : (1, Sk, G*D) bf16
    v_ref : (1, Sk, G*D) bf16
    m_ref : (1, 1, Sk)   f32 {0,1}
    o_ref : (1, Sq, G*D) f32    lane-dense slab, one dense HBM write per step
    """
    Sq = q_ref.shape[1]
    Sk = k_ref.shape[1]

    # Mask bias: computed once per step, broadcast materialized once, reused by
    # every head (no per-head broadcast_in_dim).  Finite large-negative avoids
    # NaN on fully-masked rows (reference would give NaN; documented divergence).
    mask = m_ref[0]                                                # (1, Sk)
    bias = jnp.broadcast_to(
        jnp.where(mask == 0.0, jnp.float32(-1e30), jnp.float32(0.0)), (Sq, Sk))

    for hh in range(heads_per_group):                              # static lane offsets
        lo = hh * head_dim
        hi = lo + head_dim
        qh = q_ref[0, :, lo:hi]                                    # (Sq, D) bf16
        kh = k_ref[0, :, lo:hi]                                    # (Sk, D) bf16
        vh = v_ref[0, :, lo:hi]                                    # (Sk, D) bf16

        # scores = Q K^T without materializing k.T: contract D of both (MXU, f32 acc).
        s = lax.dot_general(
            qh, kh,
            dimension_numbers=(((1,), (1,)), ((), ())),
            preferred_element_type=jnp.float32,
        )                                                          # (Sq, Sk) f32
        s = s + bias

        # softmax along keys in f32; reciprocal goes to the EUP slot.
        m_max = jnp.max(s, axis=-1, keepdims=True)
        p = jnp.exp(s - m_max)
        denom = jnp.sum(p, axis=-1, keepdims=True)
        p = p * pl.reciprocal(denom, approx=True)

        # TODO(synk): attention_probs dropout (p=0.3) is eval-mode identity here.

        ctx = jnp.dot(p.astype(vh.dtype), vh,
                      preferred_element_type=jnp.float32)          # (Sq, D) f32
        o_ref[0, :, lo:hi] = ctx.astype(o_ref.dtype)

    # TODO(synk): for very long Sk, tile over Sk with an online-softmax
    #             accumulator (flash-style) to stay inside v7x VMEM.


def pallas_attention(q3, k3, v3, mask3, *, num_heads, head_dim):
    """q3: (B, Sq, H) bf16; k3/v3: (B, Sk, H) bf16; mask3: (B, 1, Sk) f32."""
    B, Sq, H = q3.shape
    Sk = k3.shape[1]
    g = _pick_head_group(num_heads, head_dim)
    num_groups = num_heads // g
    gw = g * head_dim                                              # lane width / group
    return pl.pallas_call(
        partial(_attn_kernel, heads_per_group=g, head_dim=head_dim),
        out_shape=jax.ShapeDtypeStruct((B, Sq, H), jnp.float32),
        grid=(B, num_groups),
        in_specs=[
            pl.BlockSpec((1, Sq, gw), lambda b, i: (b, 0, i)),
            pl.BlockSpec((1, Sk, gw), lambda b, i: (b, 0, i)),
            pl.BlockSpec((1, Sk, gw), lambda b, i: (b, 0, i)),
            pl.BlockSpec((1, 1, Sk), lambda b, i: (b, 0, 0)),      # shared by all groups
        ],
        out_specs=pl.BlockSpec((1, Sq, gw), lambda b, i: (b, 0, i)),
        compiler_params=pltpu.CompilerParams(
            dimension_semantics=("parallel", "parallel")),
    )(q3, k3, v3, mask3)


# ------------------------------ Full module --------------------------------- #
def bert_attention(hidden_states, context, params, attention_mask, num_heads):
    """Pallas implementation of BertAttention.forward (eval mode)."""
    B, Sq, H = hidden_states.shape
    _, Sk, _ = context.shape
    D = H // num_heads
    scale = 1.0 / math.sqrt(D)

    wq, bq, wk, bk, wv, bv = params

    # Parameter prep (in a real deployment do this ONCE at load time):
    #  * fold 1/sqrt(D) into the Q projection (scale becomes free),
    #  * cast weights to bf16 for the MXU (f32 accumulation inside kernels).
    wq_b = (wq * scale).astype(jnp.bfloat16)
    bq_s = (bq * scale).astype(jnp.float32)
    wk_b = wk.astype(jnp.bfloat16)
    wv_b = wv.astype(jnp.bfloat16)

    # Projections: Q over hidden_states; K and V fused over context (one read).
    q = pallas_linear(hidden_states.reshape(B * Sq, H), wq_b, bq_s)       # (B*Sq, H) bf16
    k, v = pallas_kv_linear(context.reshape(B * Sk, H), wk_b, wv_b, bk, bv)

    # Head split is done by the attention BlockSpecs / static lane slices:
    # only metadata reshapes here (no transposes, no copies).
    q3 = q.reshape(B, Sq, H)
    k3 = k.reshape(B, Sk, H)
    v3 = v.reshape(B, Sk, H)
    mask3 = attention_mask.astype(jnp.float32)[:, None, :]                # (B, 1, Sk)

    # Output is already (B, Sq, H) with heads concatenated along the lane dim,
    # identical to the module's permute(0,2,1,3).view(..., all_head_size).
    return pallas_attention(q3, k3, v3, mask3, num_heads=num_heads, head_dim=D)


# --------------------------- Pure-JAX reference ------------------------------ #
def ref_bert_attention(hidden_states, context, params, attention_mask, num_heads):
    B, Sq, H = hidden_states.shape
    _, Sk, _ = context.shape
    D = H // num_heads
    wq, bq, wk, bk, wv, bv = params
    q = (hidden_states @ wq.T + bq).reshape(B, Sq, num_heads, D).transpose(0, 2, 1, 3)
    k = (context @ wk.T + bk).reshape(B, Sk, num_heads, D).transpose(0, 2, 1, 3)
    v = (context @ wv.T + bv).reshape(B, Sk, num_heads, D).transpose(0, 2, 1, 3)
    s = jnp.einsum("bhqd,bhkd->bhqk", q, k) / math.sqrt(D)
    bias = jnp.where(attention_mask[:, None, None, :] == 0, -jnp.inf, 0.0)
    s = s + bias
    p = jax.nn.softmax(s, axis=-1)
    ctx = jnp.einsum("bhqk,bhkd->bhqd", p, v)
    return ctx.transpose(0, 2, 1, 3).reshape(B, Sq, H)


if __name__ == "__main__":
    # Small config consistent with the module: hidden=32, heads=4 -> head_dim=8
    B, Sq, Sk, H, NH = 2, 8, 8, 32, 4

    key = jax.random.PRNGKey(0)
    k_hs, k_ctx, k_wq, k_bq, k_wk, k_bk, k_wv, k_bv, k_mask = jax.random.split(key, 9)

    hidden_states = jax.random.normal(k_hs, (B, Sq, H), dtype=jnp.float32)
    context = jax.random.normal(k_ctx, (B, Sk, H), dtype=jnp.float32)

    # Deterministic parameter init (nn.Linear shapes: weight (out,in), bias (out,))
    wq = 0.02 * jax.random.normal(k_wq, (H, H), dtype=jnp.float32)
    bq = 0.02 * jax.random.normal(k_bq, (H,), dtype=jnp.float32)
    wk = 0.02 * jax.random.normal(k_wk, (H, H), dtype=jnp.float32)
    bk = 0.02 * jax.random.normal(k_bk, (H,), dtype=jnp.float32)
    wv = 0.02 * jax.random.normal(k_wv, (H, H), dtype=jnp.float32)
    bv = 0.02 * jax.random.normal(k_bv, (H,), dtype=jnp.float32)
    params = (wq, bq, wk, bk, wv, bv)

    # 0/1 attention mask over keys; guarantee at least one valid key per row so
    # the -inf reference softmax is well defined.
    attention_mask = (jax.random.uniform(k_mask, (B, Sk)) > 0.3).astype(jnp.float32)
    attention_mask = attention_mask.at[:, 0].set(1.0)

    out = bert_attention(hidden_states, context, params, attention_mask, NH)
    out = jax.block_until_ready(out)

    ref = ref_bert_attention(hidden_states, context, params, attention_mask, NH)
    # Tolerance accommodates bf16 MXU inputs (f32 accumulation) and the
    # approximate EUP reciprocal in the softmax; structural bugs would be O(1)
    # relative to the ~0.05-magnitude outputs.
    np.testing.assert_allclose(np.asarray(out), np.asarray(ref), rtol=2e-2, atol=5e-3)

    print("KERNEL_OK")
</pallas_src>

<mosaic_0001>
module attributes {stable_mosaic.version = 11 : i64} {
  func.func @_linear_kernel(%arg0: i32, %arg1: memref<16x32xf32, #tpu.memory_space<vmem>>, %arg2: memref<32x32xbf16, #tpu.memory_space<vmem>>, %arg3: memref<1x32xf32, #tpu.memory_space<vmem>>, %arg4: memref<16x32xbf16, #tpu.memory_space<vmem>>) attributes {dimension_semantics = [#tpu.dimension_semantics<parallel>], iteration_bounds = array<i64: 1>, scalar_prefetch = 0 : i64, scratch_operands = 0 : i64, tpu.core_type = #tpu.core_type<tc>, window_params = [{transform_indices = @transform_0, window_bounds = array<i64: 16, 32>}, {pipeline_mode = #tpu.pipeline_mode<synchronous>, transform_indices = @transform_1, window_bounds = array<i64: 32, 32>}, {pipeline_mode = #tpu.pipeline_mode<synchronous>, transform_indices = @transform_2, window_bounds = array<i64: 1, 32>}, {transform_indices = @transform_3, window_bounds = array<i64: 16, 32>}]} {
    %c0 = arith.constant 0 : index
    %c0_0 = arith.constant 0 : index
    %0 = vector.load %arg1[%c0, %c0_0] : memref<16x32xf32, #tpu.memory_space<vmem>>, vector<16x32xf32>
    %1 = arith.truncf %0 : vector<16x32xf32> to vector<16x32xbf16>
    %c0_1 = arith.constant 0 : index
    %c0_2 = arith.constant 0 : index
    %2 = vector.load %arg2[%c0_1, %c0_2] : memref<32x32xbf16, #tpu.memory_space<vmem>>, vector<32x32xbf16>
    %cst = arith.constant dense<0.000000e+00> : vector<16x32xf32>
    %3 = tpu.matmul %1, %2, %cst {dimension_numbers = #tpu.dot_dimension_numbers<[1], [1], [0], [0], [0, 0, 1, 0], [], []>} : vector<16x32xbf16>, vector<32x32xbf16>, vector<16x32xf32> -> vector<16x32xf32>
    %c0_3 = arith.constant 0 : index
    %c0_4 = arith.constant 0 : index
    %4 = vector.load %arg3[%c0_3, %c0_4] : memref<1x32xf32, #tpu.memory_space<vmem>>, vector<1x32xf32>
    %5 = vector.broadcast %4 : vector<1x32xf32> to vector<16x32xf32>
    %6 = arith.addf %3, %5 : vector<16x32xf32>
    %7 = arith.truncf %6 : vector<16x32xf32> to vector<16x32xbf16>
    %c0_5 = arith.constant 0 : index
    %c0_6 = arith.constant 0 : index
    %8 = vector.load %arg4[%c0_5, %c0_6] : memref<16x32xbf16, #tpu.memory_space<vmem>>, vector<16x32xbf16>
    tpu.vector_store %arg4[%c0_5, %c0_6], %7 {strides = array<i32>} : memref<16x32xbf16, #tpu.memory_space<vmem>>, vector<16x32xbf16>,
    return
  }
  func.func @transform_0(%arg0: i32) -> (i32, i32) {
    %c0_i32 = arith.constant 0 : i32
    %c0_i32_0 = arith.constant 0 : i32
    return %arg0, %c0_i32 : i32, i32
  }
  func.func @transform_1(%arg0: i32) -> (i32, i32) {
    %c0_i32 = arith.constant 0 : i32
    %c0_i32_0 = arith.constant 0 : i32
    %c0_i32_1 = arith.constant 0 : i32
    return %c0_i32, %c0_i32_0 : i32, i32
  }
  func.func @transform_2(%arg0: i32) -> (i32, i32) {
    %c0_i32 = arith.constant 0 : i32
    %c0_i32_0 = arith.constant 0 : i32
    %c0_i32_1 = arith.constant 0 : i32
    return %c0_i32, %c0_i32_0 : i32, i32
  }
  func.func @transform_3(%arg0: i32) -> (i32, i32) {
    %c0_i32 = arith.constant 0 : i32
    %c0_i32_0 = arith.constant 0 : i32
    return %arg0, %c0_i32 : i32, i32
  }
}

</mosaic_0001>

<bundles_post_ra>
// kernel: tpu_custom_call.1
= control target key start
LH: loop header
LB: loop body
LE: loop exit
PB: predicated region body
PF: predicated region fallthrough
CT: control target
= control target key end

     0   :  { %8 = vsyncpa [#allocation3], 0  ;;  %s260_s0 = inlined_call_operand.hbm [shape: f32[16,32], index: 0, kind: input, shape index: {}]   ;;  %s261_s1 = inlined_call_operand.hbm [shape: bf16[32,32], index: 1, kind: input, shape index: {}]   ;;  %s262_s2 = inlined_call_operand.vmem [shape: f32[1,32], index: 2, kind: input, shape index: {}]   ;;  %s263_s3 = inlined_call_operand.hbm [shape: bf16[16,32], index: 3, kind: output, shape index: {}]  }
   0x1   :  { %9 = vsyncpa [#allocation6], 0 }
   0x2   :  { %10 = vsyncpa [#allocation4], 0  ;;  %s15_s14 = sshll.u32 %s260_s0, 4  ;;  %s215_s15 = smov [#allocation2]   ;;  %s16_s14 = int_to_ptr.hbm [resolvable:$true] %s15_s14 }
   0x3   :  { %s17_s16 = sshll.u32 %s215_s15, 4  ;;  %s28_s19 = sshll.u32 %s261_s1, 4  ;;  %s18_s16 = int_to_ptr.vmem [resolvable:$true] %s17_s16  ;;  %s29_s19 = int_to_ptr.hbm [resolvable:$true] %s28_s19 }
   0x4   :  { %s216_s20 = smov 128   ;;  %s217_s21 = smov 8  }
   0x5   :  { %23 = dma.hbm_to_vmem [thread:$0]  %s16_s14, 256, %s18_s16, [#allocation3], %s216_s20, %s216_s20, %s217_s21  }
   0x6   :  { %s218_s22 = smov [#allocation5]   ;;  %s219_s24 = smov 64  }
   0x7   :  { %s30_s23 = sshll.u32 %s218_s22, 4  ;;  %s220_s25 = smov 4   ;;  %s31_s23 = int_to_ptr.vmem [resolvable:$true] %s30_s23 }
   0x8   :  { %36 = dma.hbm_to_vmem [thread:$0]  %s29_s19, 256, %s31_s23, [#allocation6], %s219_s24, %s219_s24, %s220_s25  }
   0x9   :  { %209 = dma.done.wait [#allocation3], 256  }
   0xa   :  { %210 = vsyncadd [#allocation3], 4294967040 }
   0xb   :  { %211 = dma.done.wait [#allocation6], 256  }
   0xc   :  { %212 = vsyncadd [#allocation6], 4294967040  ;;  %vm69_vm0 = vcmask 261120   ;;  %v128_v0 = vld [vmem:[#allocation5 + $0x8] sm:$0xff]  ;;  %v127_v2 = vld [vmem:[#allocation5] sm:$0xff]  ;;  %vm95_vm1 = vcmask 257024  }
   0xd   :  { %v77_v1 = vsel %vm69_vm0, %v128_v0, 0  ;;  %v74_v3 = vsel %vm69_vm0, %v127_v2, 0  ;;  %v48_v4 = vld [vmem:[#allocation2] sm:$0xff]  ;;  %v49_v5 = vld [vmem:[#allocation2 + $0x8] sm:$0xff]  ;;  %s221_s26 = smov [#allocation7]   ;;  %s104_s30 = sshll.u32 %s263_s3, 4  ;;  %s105_s30 = int_to_ptr.hbm [resolvable:$true] %s104_s30 }
   0xe   :  { %85 = vmatpush.bf16.xpose.msra.mxu0 %v77_v1  ;;  %v50_v6 = vpack.c.bf16 %v49_v5, %v48_v4  ;;  %v136_v7 = vld [vmem:[%s262_s2] ss:$0 sm:$0xff]  ;;  %s102_s27 = sshll.u32 %s221_s26, 4  ;;  %s103_s27 = int_to_ptr.vmem [resolvable:$true] %s102_s27 }
  0x16   :  { %86 = vmatpush.bf16.xpose.msra.mxu0 %v74_v3 }
  0x1d   :  { %126 = vmatmul.msk.bf16.vlgmr.msra.gmra.mxu0 %vm69_vm0, %v50_v6 }
  0x9a   :  { %v88_v8 = vpop.f32.mrf.mxu0 }
  0x9b   :  { %v89_v9 = vadd.f32 %v136_v7, %v88_v8 }
  0x9d   :  { %v93_v10 = vpack.c.bf16 %v89_v9, %v89_v9 }
  0x9f   :  { %96 = vst.msk [vmem:[#allocation7] sm:$0xf] %vm95_vm1, %v93_v10 }
  0xa2   :  { %v90_v11 = vpop.f32.mrf.mxu0 }
  0xa3   :  { %v91_v12 = vadd.f32 %v136_v7, %v90_v11 }
  0xa5   :  { %v94_v13 = vpack.c.bf16 %v91_v12, %v91_v12 }
  0xa7   :  { %97 = vst.msk [vmem:[#allocation7 + $0x4] sm:$0xf] %vm95_vm1, %v94_v13 }
  0xa8   :  { %110 = dma.vmem_to_hbm [thread:$0]  %s103_s27, 128, %s105_s30, [#allocation4], %s219_s24, %s219_s24, %s220_s25  }
  0xa9   :  { %213 = dma.done.wait [#allocation4], 128  }
  0xaa   :  { %214 = vsyncadd [#allocation4], 4294967168 }
  0xab   :  { %115 = vsyncpa [#allocation3], 1 }
  0xac   :  { %116 = vsyncpa [#allocation6], 1 }
  0xad   :  { %117 = vsyncpa [#allocation4], 1 }

</bundles_post_ra>
